<compile_context>
chip_gen: v7x
topology: tpu7x:2x2x1
jax: 0.10.0
libtpu: 0.0.40
codegen_flags: <defaults>
</compile_context>

<pallas_src>
import functools

import jax
import jax.numpy as jnp
from jax.experimental import pallas as pl
from jax.experimental.pallas import tpu as pltpu


def _round_up(n, m):
    return ((n + m - 1) // m) * m


def _vmem_capacity_bytes():
    """Physical VMEM per TensorCore; conservative fallback if the query fails."""
    try:
        return int(pltpu.get_tpu_info().vmem_capacity_bytes)
    except Exception:
        return 64 * 1024 * 1024  # v7x (smallest per-TC VMEM) as the safe default


def _layer_norm_kernel(x_ref, gamma_ref, beta_ref, o_ref, *, eps, hidden):
    # x_ref: (block_rows, hidden_p); gamma_ref/beta_ref: (1, hidden_p) f32.
    # hidden_p (the block width) may be padded up to a multiple of 128; the
    # true feature count is `hidden` and padded lanes of x are zero.
    x = x_ref[...].astype(jnp.float32)
    hidden_p = x.shape[-1]

    # Zero padding contributes nothing to the row sum, so the mean is exact.
    mean = jnp.sum(x, axis=-1, keepdims=True) * (1.0 / hidden)
    xc = x - mean

    sq = xc * xc
    if hidden_p != hidden:
        # Mask padded lanes out of the variance reduction (they hold -mean).
        lane = jax.lax.broadcasted_iota(jnp.int32, (1, hidden_p), 1)
        sq = jnp.where(lane < hidden, sq, 0.0)
    var = jnp.sum(sq, axis=-1, keepdims=True) * (1.0 / hidden)
    std = jnp.sqrt(var)

    # Exact reciprocal: operand is only (block_rows, 1); cost is hidden under
    # the HBM DMA and it keeps parity with PyTorch's divide (eps added to STD).
    inv = 1.0 / (std + eps)

    gamma = gamma_ref[...]        # (1, hidden_p) f32, pre-cast in the wrapper
    beta = beta_ref[...]

    # Streaming epilogue -- no (block_rows, hidden_p) f32 `scale` temporary.
    # NOTE: rows are independent; Pallas masks the ragged-last-block writeback.
    # Any future cross-row reduction over this tile must re-mask those rows.
    o_ref[...] = ((xc * inv) * gamma + beta).astype(o_ref.dtype)


def layer_norm(x, gamma, beta, eps=1e-12, block_rows=None):
    """LayerNorm over the last axis; x may have arbitrary leading dims."""
    orig_shape = x.shape
    hidden = orig_shape[-1]
    x2d = x.reshape(-1, hidden)
    rows = x2d.shape[0]

    # Guarantee a lane-dense (multiple-of-128) last dim so output stores are
    # full-width vst's instead of masked partial stores. No-op when hidden is
    # already a multiple of 128 (the usual case for real models).
    hidden_p = _round_up(hidden, 128)
    pad_w = hidden_p - hidden
    if pad_w:
        x2d = jnp.pad(x2d, ((0, 0), (0, pad_w)))

    gamma_f = gamma.astype(jnp.float32).reshape(1, hidden)
    beta_f = beta.astype(jnp.float32).reshape(1, hidden)
    if pad_w:
        gamma_f = jnp.pad(gamma_f, ((0, 0), (0, pad_w)))
        beta_f = jnp.pad(beta_f, ((0, 0), (0, pad_w)))

    itemsize = jnp.dtype(x.dtype).itemsize
    # Sublane-aligned row multiple: 8 for f32, 16 for bf16, 32 for int8/fp8.
    row_align = max(8, 32 // itemsize)

    vmem_cap = _vmem_capacity_bytes()

    if block_rows is None:
        # Tile budget: half of physical VMEM, capped at 48 MiB (v5e/v6e have
        # 128 MiB; v7x's 64 MiB -> 32 MiB budget with 16 MiB headroom).
        budget = min(vmem_cap // 2, 48 * 1024 * 1024)
        # Per-row VMEM: double-buffered input + output at native width plus
        # ~4 f32 temporaries Mosaic may keep live (x upcast, xc, product,
        # pre-cast result).
        per_row = hidden_p * (4 * itemsize + 4 * 4)
        block_rows = max(row_align, budget // per_row)
        # No hard row cap: let the VMEM budget bind (amortizes per-step grid
        # overhead, which matters most on v7x's fast HBM for small hidden).
    block_rows = min(block_rows, _round_up(rows, row_align))
    block_rows = _round_up(block_rows, row_align)

    # Ragged last block is handled by Pallas (masked writeback); no row padding.
    grid = (pl.cdiv(rows, block_rows),)
    kernel = functools.partial(_layer_norm_kernel, eps=eps, hidden=hidden)

    # Raise scoped VMEM but keep headroom under physical capacity
    # (48 MiB on v7x's 64 MiB/TC, 96 MiB on v5e/v6e's 128 MiB).
    vmem_limit_bytes = vmem_cap * 3 // 4

    out = pl.pallas_call(
        kernel,
        out_shape=jax.ShapeDtypeStruct((rows, hidden_p), x.dtype),
        grid_spec=pltpu.PrefetchScalarGridSpec(
            num_scalar_prefetch=0,
            grid=grid,
            in_specs=[
                pl.BlockSpec((block_rows, hidden_p), lambda i: (i, 0)),
                pl.BlockSpec((1, hidden_p), lambda i: (0, 0)),
                pl.BlockSpec((1, hidden_p), lambda i: (0, 0)),
            ],
            out_specs=pl.BlockSpec((block_rows, hidden_p), lambda i: (i, 0)),
        ),
        compiler_params=pltpu.CompilerParams(
            # "parallel" is portable; on v7x an explicit CORE_PARALLEL split
            # of the row grid would engage both TensorCores.
            dimension_semantics=("parallel",),
            vmem_limit_bytes=vmem_limit_bytes,
        ),
    )(x2d, gamma_f, beta_f)

    if pad_w:
        out = out[:, :hidden]
    return out.reshape(orig_shape)


def _reference_layer_norm(x, gamma, beta, eps):
    # Direct transcription of the PyTorch forward, in plain JAX (for checking).
    xf = x.astype(jnp.float32)
    mean = jnp.mean(xf, axis=-1, keepdims=True)
    std = jnp.sqrt(jnp.mean((xf - mean) ** 2, axis=-1, keepdims=True))
    return (gamma * (xf - mean) / (std + eps) + beta).astype(x.dtype)


if __name__ == "__main__":
    batch, seq, hidden = 2, 8, 32
    eps = 1e-12

    key = jax.random.PRNGKey(0)
    x = jax.random.normal(key, (batch, seq, hidden), dtype=jnp.float32)

    # Deterministic parameter init, matching nn.Parameter(torch.ones/zeros).
    gamma = jnp.ones((hidden,), dtype=jnp.float32)
    beta = jnp.zeros((hidden,), dtype=jnp.float32)

    out = layer_norm(x, gamma, beta, eps=eps)
    out = jax.block_until_ready(out)

    ref = _reference_layer_norm(x, gamma, beta, eps)
    assert out.shape == x.shape and out.dtype == x.dtype
    # Exact divide in-kernel -> tight tolerance (only reduce-order differences).
    assert jnp.allclose(out, ref, atol=1e-5, rtol=1e-5)

    print("KERNEL_OK")
</pallas_src>

<mosaic_0001>
module attributes {stable_mosaic.version = 11 : i64} {
  func.func @_layer_norm_kernel(%arg0: i32, %arg1: memref<16x128xf32, #tpu.memory_space<vmem>>, %arg2: memref<1x128xf32, #tpu.memory_space<vmem>>, %arg3: memref<1x128xf32, #tpu.memory_space<vmem>>, %arg4: memref<16x128xf32, #tpu.memory_space<vmem>>) attributes {dimension_semantics = [#tpu.dimension_semantics<parallel>], iteration_bounds = array<i64: 1>, scalar_prefetch = 0 : i64, scratch_operands = 0 : i64, tpu.core_type = #tpu.core_type<tc>, window_params = [{transform_indices = @transform_0, window_bounds = array<i64: 16, 128>}, {pipeline_mode = #tpu.pipeline_mode<synchronous>, transform_indices = @transform_1, window_bounds = array<i64: 1, 128>}, {pipeline_mode = #tpu.pipeline_mode<synchronous>, transform_indices = @transform_2, window_bounds = array<i64: 1, 128>}, {transform_indices = @transform_3, window_bounds = array<i64: 16, 128>}]} {
    %c0 = arith.constant 0 : index
    %c0_0 = arith.constant 0 : index
    %0 = vector.load %arg1[%c0, %c0_0] : memref<16x128xf32, #tpu.memory_space<vmem>>, vector<16x128xf32>
    %cst = arith.constant dense<0.000000e+00> : vector<16xf32>
    %1 = vector.multi_reduction <add>, %0, %cst [1] : vector<16x128xf32> to vector<16xf32>
    %2 = vector.shape_cast %1 : vector<16xf32> to vector<16x1xf32>
    %cst_1 = arith.constant 3.125000e-02 : f32
    %3 = vector.broadcast %cst_1 : f32 to vector<16x1xf32>
    %4 = arith.mulf %2, %3 : vector<16x1xf32>
    %5 = vector.broadcast %4 : vector<16x1xf32> to vector<16x128xf32>
    %6 = arith.subf %0, %5 : vector<16x128xf32>
    %7 = arith.mulf %6, %6 : vector<16x128xf32>
    %8 = tpu.iota {dimensions = array<i32: 1>} : vector<1x128xi32>
    %c32_i32 = arith.constant 32 : i32
    %9 = vector.broadcast %c32_i32 : i32 to vector<1x128xi32>
    %10 = arith.cmpi slt, %8, %9 : vector<1x128xi32>
    %cst_2 = arith.constant 0.000000e+00 : f32
    %11 = vector.shape_cast %10 : vector<1x128xi1> to vector<1x128xi1>
    %12 = vector.broadcast %11 : vector<1x128xi1> to vector<16x128xi1>
    %13 = vector.broadcast %cst_2 : f32 to vector<16x128xf32>
    %14 = arith.select %12, %7, %13 : vector<16x128xi1>, vector<16x128xf32>
    %cst_3 = arith.constant dense<0.000000e+00> : vector<16xf32>
    %15 = vector.multi_reduction <add>, %14, %cst_3 [1] : vector<16x128xf32> to vector<16xf32>
    %16 = vector.shape_cast %15 : vector<16xf32> to vector<16x1xf32>
    %cst_4 = arith.constant 3.125000e-02 : f32
    %17 = vector.broadcast %cst_4 : f32 to vector<16x1xf32>
    %18 = arith.mulf %16, %17 : vector<16x1xf32>
    %19 = math.sqrt %18 : vector<16x1xf32>
    %cst_5 = arith.constant 9.99999996E-13 : f32
    %20 = vector.broadcast %cst_5 : f32 to vector<16x1xf32>
    %21 = arith.addf %19, %20 : vector<16x1xf32>
    %cst_6 = arith.constant 1.000000e+00 : f32
    %22 = vector.broadcast %cst_6 : f32 to vector<16x1xf32>
    %23 = arith.divf %22, %21 : vector<16x1xf32>
    %c0_7 = arith.constant 0 : index
    %c0_8 = arith.constant 0 : index
    %24 = vector.load %arg2[%c0_7, %c0_8] : memref<1x128xf32, #tpu.memory_space<vmem>>, vector<1x128xf32>
    %c0_9 = arith.constant 0 : index
    %c0_10 = arith.constant 0 : index
    %25 = vector.load %arg3[%c0_9, %c0_10] : memref<1x128xf32, #tpu.memory_space<vmem>>, vector<1x128xf32>
    %26 = vector.broadcast %23 : vector<16x1xf32> to vector<16x128xf32>
    %27 = arith.mulf %6, %26 : vector<16x128xf32>
    %28 = vector.broadcast %24 : vector<1x128xf32> to vector<16x128xf32>
    %29 = arith.mulf %27, %28 : vector<16x128xf32>
    %30 = vector.broadcast %25 : vector<1x128xf32> to vector<16x128xf32>
    %31 = arith.addf %29, %30 : vector<16x128xf32>
    %c0_11 = arith.constant 0 : index
    %c0_12 = arith.constant 0 : index
    %32 = vector.load %arg4[%c0_11, %c0_12] : memref<16x128xf32, #tpu.memory_space<vmem>>, vector<16x128xf32>
    tpu.vector_store %arg4[%c0_11, %c0_12], %31 {strides = array<i32>} : memref<16x128xf32, #tpu.memory_space<vmem>>, vector<16x128xf32>,
    return
  }
  func.func @transform_0(%arg0: i32) -> (i32, i32) {
    %c0_i32 = arith.constant 0 : i32
    %c0_i32_0 = arith.constant 0 : i32
    return %arg0, %c0_i32 : i32, i32
  }
  func.func @transform_1(%arg0: i32) -> (i32, i32) {
    %c0_i32 = arith.constant 0 : i32
    %c0_i32_0 = arith.constant 0 : i32
    %c0_i32_1 = arith.constant 0 : i32
    return %c0_i32, %c0_i32_0 : i32, i32
  }
  func.func @transform_2(%arg0: i32) -> (i32, i32) {
    %c0_i32 = arith.constant 0 : i32
    %c0_i32_0 = arith.constant 0 : i32
    %c0_i32_1 = arith.constant 0 : i32
    return %c0_i32, %c0_i32_0 : i32, i32
  }
  func.func @transform_3(%arg0: i32) -> (i32, i32) {
    %c0_i32 = arith.constant 0 : i32
    %c0_i32_0 = arith.constant 0 : i32
    return %arg0, %c0_i32 : i32, i32
  }
}

</mosaic_0001>

<bundles_post_ra>
// kernel: tpu_custom_call.1
= control target key start
LH: loop header
LB: loop body
LE: loop exit
PB: predicated region body
PF: predicated region fallthrough
CT: control target
= control target key end

     0   :  { %8 = vsyncpa [#allocation3], 0  ;;  %s235_s0 = inlined_call_operand.hbm [shape: f32[16,128], index: 0, kind: input, shape index: {}]   ;;  %s236_s1 = inlined_call_operand.vmem [shape: f32[1,128], index: 1, kind: input, shape index: {}]   ;;  %s237_s2 = inlined_call_operand.vmem [shape: f32[1,128], index: 2, kind: input, shape index: {}]   ;;  %s238_s3 = inlined_call_operand.hbm [shape: f32[16,128], index: 3, kind: output, shape index: {}]  }
   0x1   :  { %9 = vsyncpa [#allocation4], 0  ;;  %s175_s12 = smov [#allocation2]   ;;  %s127_s16 = scalar_lea.hbm %s235_s0, 256 }
   0x2   :  { %s15_s13 = sshll.u32 %s175_s12, 4  ;;  %p128_p0 = scmp.ne.s32.totalorder %s235_s0, %s127_s16  ;;  %s16_s13 = int_to_ptr.vmem [resolvable:$true] %s15_s13 }
   0x3   :  { %p131_p1 = scmp.lt.u32.totalorder %s127_s16, %s235_s0 }
   0x5   :  { %p133_p2 = pnand %p131_p1, %p128_p0 }
   0x7   :  { %136 = shalt.err (!%p133_p2)
}
   0x8   :  { %s137_s21 = scalar_lea.vmem %s16_s13, 256  ;;  %p142_p4 = scmp.lt.s32.totalorder %s16_s13, %s16_s13 }
   0x9   :  { %p138_p3 = scmp.ne.s32.totalorder %s16_s13, %s137_s21  ;;  %p143_p5 = scmp.lt.s32.totalorder %s137_s21, %s137_s21 }
   0xb   :  { %p144_p6 = por %p143_p5, %p142_p4 }
   0xd   :  { %p145_p7 = pnand %p144_p6, %p138_p3 }
   0xf   :  { %148 = shalt.err (!%p145_p7)
}
  0x10   :  { %s176_s22 = smov 128   ;;  %s177_s23 = smov 8  }
  0x11   :  { %21 = dma.hbm_to_vmem [thread:$0]  %s235_s0, 256, %s16_s13, [#allocation3], %s176_s22, %s176_s22, %s177_s23  }
  0x12   :  { %171 = dma.done.wait [#allocation3], 256  }
  0x13   :  { %172 = vsyncadd [#allocation3], 4294967040  ;;  %v29_v0 = vld [vmem:[#allocation2] sm:$0xff]  ;;  %v30_v1 = vld [vmem:[#allocation2 + $0x8] sm:$0xff]  ;;  %v41_v2 = vlaneseq  ;;  %s178_s29 = smov [#allocation5]  }
  0x14   :  { %31 = vadd.xlane.f32.xlu0 %v29_v0  ;;  %v113_v31 = vld [vmem:[%s236_s1] ss:$0 sm:$0xff]  ;;  %s101_s30 = sshll.u32 %s178_s29, 4  ;;  %s102_s30 = int_to_ptr.vmem [resolvable:$true] %s101_s30 }
  0x15   :  { %v42_v4 = vand.u32 127, %v41_v2  ;;  %v114_v33 = vld [vmem:[%s237_s2] ss:$0 sm:$0xff]  ;;  %s149_s4 = scalar_lea.vmem %s102_s30, 256  ;;  %p154_p9 = scmp.lt.s32.totalorder %s102_s30, %s102_s30 }
  0x16   :  { %p150_p8 = scmp.ne.s32.totalorder %s102_s30, %s149_s4  ;;  %p155_p10 = scmp.lt.s32.totalorder %s149_s4, %s149_s4 }
  0x17   :  { %vm43_vm0 = vcmp.lt.s32.totalorder %v42_v4, 32 }
  0x18   :  { %33 = vadd.xlane.f32.xlu0 %v30_v1  ;;  %p156_p11 = por %p155_p10, %p154_p9 }
  0x1a   :  { %p157_p12 = pnand %p156_p11, %p150_p8 }
  0xa1   :  { %v32_v3 = vpop.xlane.xlu0 %31 }
  0xa2   :  { %v35_v5 = vmul.f32 0.03125, %v32_v3 }
  0xa4   :  { %v37_v6 = vsub.f32 %v29_v0, %v35_v5 }
  0xa5   :  { %v34_v7 = vpop.xlane.xlu0 %33 }
  0xa6   :  { %v36_v8 = vmul.f32 0.03125, %v34_v7  ;;  %v39_v9 = vmul.f32 %v37_v6, %v37_v6 }
  0xa8   :  { %v38_v10 = vsub.f32 %v30_v1, %v36_v8  ;;  %v46_v11 = vsel %vm43_vm0, %v39_v9, 0.0 }
  0xa9   :  { %48 = vadd.xlane.f32.xlu1 %v46_v11 }
  0xaa   :  { %v40_v12 = vmul.f32 %v38_v10, %v38_v10 }
  0xac   :  { %v47_v13 = vsel %vm43_vm0, %v40_v12, 0.0 }
  0xad   :  { %50 = vadd.xlane.f32.xlu1 %v47_v13 }
 0x136   :  { %v49_v14 = vpop.xlane.xlu1 %48 }
 0x137   :  { %v52_v15 = vmul.f32 0.03125, %v49_v14 }
 0x139   :  { %119 = vrsqrt.f32 %v52_v15  ;;  %vm56_vm1 = vcmp.eq.f32.partialorder %v52_v15, inf  ;;  %v59_v20 = vand.u32 2147483648, %v52_v15  ;;  %vm58_vm2 = vcmp.eq.f32.partialorder %v52_v15, 0.0 }
 0x13a   :  { %v51_v16 = vpop.xlane.xlu1 %50 }
 0x13b   :  { %v53_v17 = vmul.f32 0.03125, %v51_v16 }
 0x13d   :  { %121 = vrsqrt.f32 %v53_v17  ;;  %vm63_vm3 = vcmp.eq.f32.partialorder %v53_v17, inf  ;;  %v66_v26 = vand.u32 2147483648, %v53_v17  ;;  %vm65_vm4 = vcmp.eq.f32.partialorder %v53_v17, 0.0 }
 0x143   :  { %v120_v18 = vpop.eup %119 }
 0x144   :  { %v55_v19 = vmul.f32 %v120_v18, %v52_v15 }
 0x146   :  { %v57_v21 = vsel %vm56_vm1, %v52_v15, %v55_v19 }
 0x147   :  { %v122_v22 = vpop.eup %121  ;;  %v60_v23 = vsel %vm58_vm2, %v59_v20, %v57_v21 }
 0x148   :  { %v62_v24 = vmul.f32 %v122_v22, %v53_v17  ;;  %v68_v25 = vadd.f32 1e-12, %v60_v23 }
 0x14a   :  { %v64_v27 = vsel %vm63_vm3, %v53_v17, %v62_v24  ;;  %123 = vrcp.f32 %v68_v25 }
 0x14b   :  { %v67_v28 = vsel %vm65_vm4, %v66_v26, %v64_v27 }
 0x14c   :  { %v69_v29 = vadd.f32 1e-12, %v67_v28 }
 0x14e   :  { %125 = vrcp.f32 %v69_v29 }
 0x154   :  { %v124_v30 = vpop.eup %123 }
 0x155   :  { %v76_v32 = vmul.f32 %v124_v30, %v37_v6 }
 0x157   :  { %v84_v34 = vmul.f32 %v113_v31, %v76_v32 }
 0x158   :  { %v126_v35 = vpop.eup %125 }
 0x159   :  { %v77_v36 = vmul.f32 %v126_v35, %v38_v10  ;;  %v92_v37 = vadd.f32 %v114_v33, %v84_v34 }
 0x15b   :  { %v85_v38 = vmul.f32 %v113_v31, %v77_v36  ;;  %94 = vst [vmem:[#allocation5] sm:$0xff] %v92_v37 }
 0x15d   :  { %v93_v39 = vadd.f32 %v114_v33, %v85_v38 }
 0x15f   :  { %95 = vst [vmem:[#allocation5 + $0x8] sm:$0xff] %v93_v39 }
 0x160   :  { %160 = shalt.err (!%p157_p12)
}
 0x161   :  { %s161_s5 = scalar_lea.hbm %s238_s3, 256 }
 0x162   :  { %p162_p13 = scmp.ne.s32.totalorder %s238_s3, %s161_s5  ;;  %p165_p0 = scmp.lt.u32.totalorder %s161_s5, %s238_s3 }
 0x164   :  { %p167_p1 = pnand %p165_p0, %p162_p13 }
 0x166   :  { %170 = shalt.err (!%p167_p1)
}
 0x167   :  { %107 = dma.vmem_to_hbm [thread:$0]  %s102_s30, 256, %s238_s3, [#allocation4], %s176_s22, %s176_s22, %s177_s23  }
 0x168   :  { %173 = dma.done.wait [#allocation4], 256  }
 0x169   :  { %174 = vsyncadd [#allocation4], 4294967040 }
 0x16a   :  { %111 = vsyncpa [#allocation3], 1 }
 0x16b   :  { %112 = vsyncpa [#allocation4], 1 }

</bundles_post_ra>
